<compile_context>
chip_gen: v5e
topology: v5e:2x2
jax: 0.10.0
libtpu: 0.0.40
codegen_flags: <defaults>
</compile_context>

<pallas_src>
import jax
import jax.numpy as jnp
from jax.experimental import pallas as pl
from jax.experimental.pallas import tpu as pltpu


def _cls_head_kernel(x_ref, w_ref, b_ref, o_ref):
    # x_ref: [TB, F]   w_ref: [F, C_pad]   b_ref: [1, C_pad]   o_ref: [TB, C_pad]
    acc = jnp.dot(x_ref[...], w_ref[...], preferred_element_type=jnp.float32)
    o_ref[...] = (acc + b_ref[...].astype(jnp.float32)).astype(o_ref.dtype)


def _round_up(v, m):
    return ((v + m - 1) // m) * m


def _pick_batch_tile(bs, feat, c_pad, x_isz, o_isz, w_bytes):
    """Batch tile from a total-VMEM budget.

    Budget covers: double-buffered activations + double-buffered output +
    single-buffered resident weight + bias.  32 MiB total fits comfortably on
    every generation (v7x has 64 MiB per TC; v5e/v6e have 128 MiB physical).
    """
    total_budget = 32 * 1024 * 1024
    fixed = w_bytes + 2 * c_pad * 4                     # weight (1 buf) + bias
    avail = max(total_budget - fixed, 2 * 1024 * 1024)
    per_row = 2 * feat * x_isz + 2 * c_pad * o_isz      # 2x act + 2x out rows
    tb = avail // max(per_row, 1)
    tb = max((tb // 16) * 16, 16)                       # mult of 16 (bf16 packing)
    return tb


def classification_head(x, weight, bias, *, block_bs=None, compute_dtype=None):
    """
    x:      [bs, n_vars, d_model, num_patch]
    weight: [n_classes, n_vars*d_model]   (native PyTorch Linear layout)
    bias:   [n_classes]
    returns [bs, n_classes]
    """
    bs, n_vars, d_model, num_patch = x.shape
    n_classes, feat_w = weight.shape
    feat = n_vars * d_model
    assert feat_w == feat, "weight in_features must equal n_vars*d_model"

    # Last-patch select + flatten, fused by XLA into one strided-slice kernel.
    # TODO(synk): the remaining HBM pass here disappears only with a
    # producer-side layout change (emit a contiguous [bs, feat] last-patch
    # slab); fusing the gather in-kernel only pays off for num_patch <= ~3.
    x_flat = x[:, :, :, -1].reshape(bs, feat)

    # TODO(synk): nn.Dropout is identity at inference; training-mode dropout
    # (pltpu.prng_* Bernoulli mask + 1/(1-p) scale) is not implemented.

    out_dtype = x.dtype
    if compute_dtype is not None and compute_dtype != x_flat.dtype:
        x_flat = x_flat.astype(compute_dtype)
        weight = weight.astype(compute_dtype)

    x_isz = jnp.dtype(x_flat.dtype).itemsize
    w_isz = jnp.dtype(weight.dtype).itemsize
    o_isz = jnp.dtype(out_dtype).itemsize

    # Lane-dense output: pad classes to a multiple of 128 lanes.
    c_pad = max(128, _round_up(n_classes, 128))

    # One-time wrapper transpose + zero-pad of the (small) weight/bias.
    w_t = jnp.zeros((feat, c_pad), weight.dtype).at[:, :n_classes].set(weight.T)
    b_p = jnp.zeros((1, c_pad), jnp.float32).at[0, :n_classes].set(
        bias.astype(jnp.float32))
    w_bytes = feat * c_pad * w_isz

    # --- batch tile ---------------------------------------------------------
    if block_bs is not None:
        tb = max((int(block_bs) // 8) * 8, 8)           # validate user tile
    else:
        tb = _pick_batch_tile(bs, feat, c_pad, x_isz, o_isz, w_bytes)

    if tb >= bs:
        if bs >= 512:
            # Keep >= 2 batch blocks so both v7x TensorCores get fed.
            tb = max(_round_up(pl.cdiv(bs, 2), 16), 16)
        else:
            tb = bs          # single full-batch block (equal-full-dim layout)
    n_blocks = pl.cdiv(bs, tb)

    # Explicit VMEM limit so the v5e 16 MiB scoped default never bites.
    vmem_bytes = (2 * tb * feat * x_isz        # double-buffered activations
                  + w_bytes                    # resident single-buffered weight
                  + c_pad * 4                  # bias
                  + 2 * tb * c_pad * o_isz)    # double-buffered output
    vmem_limit = int(max(vmem_bytes + (8 << 20), 32 << 20))

    cost = pl.CostEstimate(
        flops=2 * bs * feat * c_pad,
        transcendentals=0,
        bytes_accessed=(bs * feat * x_isz + w_bytes + c_pad * 4
                        + bs * c_pad * o_isz),
    )

    out = pl.pallas_call(
        _cls_head_kernel,
        out_shape=jax.ShapeDtypeStruct((bs, c_pad), out_dtype),
        grid=(n_blocks,),
        in_specs=[
            # Activation tile marches over the batch axis (double-buffered).
            pl.BlockSpec((tb, feat), lambda i: (i, 0)),
            # Weight/bias: constant index_map -> resident; single buffer.
            pl.BlockSpec((feat, c_pad), lambda i: (0, 0),
                         pipeline_mode=pl.Buffered(1)),
            pl.BlockSpec((1, c_pad), lambda i: (0, 0),
                         pipeline_mode=pl.Buffered(1)),
        ],
        out_specs=pl.BlockSpec((tb, c_pad), lambda i: (i, 0)),
        compiler_params=pltpu.CompilerParams(
            dimension_semantics=("parallel",),
            vmem_limit_bytes=vmem_limit,
        ),
        cost_estimate=cost,
    )(x_flat, w_t, b_p)

    return out[:, :n_classes]


if __name__ == "__main__":
    # Small shapes consistent with the module's forward.
    bs, n_vars, d_model, num_patch = 2, 4, 32, 8
    n_classes = 8
    feat = n_vars * d_model

    key = jax.random.PRNGKey(0)
    kx, kw, kb = jax.random.split(key, 3)

    x = jax.random.normal(kx, (bs, n_vars, d_model, num_patch), dtype=jnp.float32)

    # Deterministic PyTorch-like Linear init: U(-1/sqrt(in), 1/sqrt(in)).
    bound = 1.0 / (feat ** 0.5)
    weight = jax.random.uniform(kw, (n_classes, feat), jnp.float32, -bound, bound)
    bias = jax.random.uniform(kb, (n_classes,), jnp.float32, -bound, bound)

    head = jax.jit(classification_head)
    y = head(x, weight, bias)
    jax.block_until_ready(y)

    # Reference check in plain JAX (same math).
    x_flat = x[:, :, :, -1].reshape(bs, feat)
    y_ref = x_flat @ weight.T + bias
    assert y.shape == (bs, n_classes)
    assert jnp.allclose(y, y_ref, atol=1e-5, rtol=1e-5)

    print("KERNEL_OK")
</pallas_src>

<mosaic_0001>
module attributes {stable_mosaic.version = 11 : i64} {
  func.func @_cls_head_kernel(%arg0: i32, %arg1: memref<2x128xf32, #tpu.memory_space<vmem>>, %arg2: memref<128x128xf32, #tpu.memory_space<vmem>>, %arg3: memref<1x128xf32, #tpu.memory_space<vmem>>, %arg4: memref<2x128xf32, #tpu.memory_space<vmem>>) attributes {dimension_semantics = [#tpu.dimension_semantics<parallel>], iteration_bounds = array<i64: 1>, scalar_prefetch = 0 : i64, scratch_operands = 0 : i64, tpu.core_type = #tpu.core_type<tc>, window_params = [{transform_indices = @transform_0, window_bounds = array<i64: 2, 128>}, {pipeline_mode = #tpu.pipeline_mode<synchronous>, transform_indices = @transform_1, window_bounds = array<i64: 128, 128>}, {pipeline_mode = #tpu.pipeline_mode<synchronous>, transform_indices = @transform_2, window_bounds = array<i64: 1, 128>}, {transform_indices = @transform_3, window_bounds = array<i64: 2, 128>}]} {
    %c0 = arith.constant 0 : index
    %c0_0 = arith.constant 0 : index
    %0 = vector.load %arg1[%c0, %c0_0] : memref<2x128xf32, #tpu.memory_space<vmem>>, vector<2x128xf32>
    %c0_1 = arith.constant 0 : index
    %c0_2 = arith.constant 0 : index
    %1 = vector.load %arg2[%c0_1, %c0_2] : memref<128x128xf32, #tpu.memory_space<vmem>>, vector<128x128xf32>
    %cst = arith.constant dense<0.000000e+00> : vector<2x128xf32>
    %2 = tpu.matmul %0, %1, %cst {dimension_numbers = #tpu.dot_dimension_numbers<[1], [0], [0], [1], [0, 0, 1, 1], [], []>} : vector<2x128xf32>, vector<128x128xf32>, vector<2x128xf32> -> vector<2x128xf32>
    %c0_3 = arith.constant 0 : index
    %c0_4 = arith.constant 0 : index
    %3 = vector.load %arg3[%c0_3, %c0_4] : memref<1x128xf32, #tpu.memory_space<vmem>>, vector<1x128xf32>
    %4 = vector.broadcast %3 : vector<1x128xf32> to vector<2x128xf32>
    %5 = arith.addf %2, %4 : vector<2x128xf32>
    %c0_5 = arith.constant 0 : index
    %c0_6 = arith.constant 0 : index
    %6 = vector.load %arg4[%c0_5, %c0_6] : memref<2x128xf32, #tpu.memory_space<vmem>>, vector<2x128xf32>
    tpu.vector_store %arg4[%c0_5, %c0_6], %5 {strides = array<i32>} : memref<2x128xf32, #tpu.memory_space<vmem>>, vector<2x128xf32>,
    return
  }
  func.func @transform_0(%arg0: i32) -> (i32, i32) {
    %c0_i32 = arith.constant 0 : i32
    %c0_i32_0 = arith.constant 0 : i32
    return %arg0, %c0_i32 : i32, i32
  }
  func.func @transform_1(%arg0: i32) -> (i32, i32) {
    %c0_i32 = arith.constant 0 : i32
    %c0_i32_0 = arith.constant 0 : i32
    %c0_i32_1 = arith.constant 0 : i32
    return %c0_i32, %c0_i32_0 : i32, i32
  }
  func.func @transform_2(%arg0: i32) -> (i32, i32) {
    %c0_i32 = arith.constant 0 : i32
    %c0_i32_0 = arith.constant 0 : i32
    %c0_i32_1 = arith.constant 0 : i32
    return %c0_i32, %c0_i32_0 : i32, i32
  }
  func.func @transform_3(%arg0: i32) -> (i32, i32) {
    %c0_i32 = arith.constant 0 : i32
    %c0_i32_0 = arith.constant 0 : i32
    return %arg0, %c0_i32 : i32, i32
  }
}

</mosaic_0001>

<bundles_post_ra>
// kernel: squeeze.1
= control target key start
LH: loop header
LB: loop body
LE: loop exit
PB: predicated region body
PF: predicated region fallthrough
CT: control target
= control target key end

     0   :  { %s29_s10 = smov 3  ;;  %s45_s11 = smov 96   ;;  %vm12_vm0 = vcmask 261120   ;;  %vm19_vm1 = vcmask 1048320   ;;  %vm26_vm2 = vcmask 785920   ;;  %vm33_vm3 = vcmask 523520   ;;  %s67_s0 = inlined_call_operand.vmem [shape: f32[2,4,32], index: 0, kind: input, shape index: {}]   ;;  %s68_s1 = inlined_call_operand.vmem [shape: f32[2,128], index: 1, kind: output, shape index: {}]  }
   0x1   :  { %v41_v0 = vld [vmem:[%s67_s0 + $0x4] sm:$0xf]  ;;  %v8_v1 = vld [vmem:[%s67_s0] sm:$0xf]  ;;  %s15_s0 = smov 3  ;;  %s46_s12 = smov 32  }
   0x2   :  { %7 = vst [vmem:[#allocation1 + $0x8] sm:$0xf] %v41_v0  ;;  %s22_s13 = smov 3  ;;  %s47_s14 = smov 64  }
   0x3   :  { %9 = vst [vmem:[#allocation1] sm:$0xf] %v8_v1  ;;  %s10_s15 = smov 3 }
   0xa   :  { %v16_v2 = vld [vmem:[#allocation1 + $0x3] ss:$8 sm:%s15_s0]   ;;  %v30_v3 = vld [vmem:[#allocation1 + $0x1] ss:$8 sm:%s29_s10]   ;;  %v23_v4 = vld [vmem:[#allocation1 + $0x2] ss:$8 sm:%s22_s13]  }
   0xb   :  { %17 = vrot.lane.b32.xlu0 %v16_v2, %s45_s11  ;;  %31 = vrot.lane.b32.xlu1 %v30_v3, %s46_s12  ;;  %v11_v5 = vld [vmem:[#allocation1] ss:$8 sm:%s10_s15]  }
   0xc   :  { %13 = vst.msk [vmem:[#allocation0] sm:$0x3] %vm12_vm0, %v11_v5  }
  0x13   :  { %24 = vrot.lane.b32.xlu0 %v23_v4, %s47_s14 }
  0x7d   :  { %v18_v6 = vpop.permute.xlu0 %17   ;;  %v32_v7 = vpop.permute.xlu1 %31  }
  0x7e   :  { %20 = vst.msk [vmem:[#allocation0] sm:$0x3] %vm19_vm1, %v18_v6  }
  0x85   :  { %v25_v8 = vpop.permute.xlu0 %24  }
  0x86   :  { %27 = vst.msk [vmem:[#allocation0] sm:$0x3] %vm26_vm2, %v25_v8  }
  0x87   :  { %34 = vst.msk [vmem:[#allocation0] sm:$0x3] %vm33_vm3, %v32_v7  }
  0x8e   :  { %v37_v9 = vld [vmem:[#allocation0] sm:$0x3] }
  0x8f   :  { %40 = vst [vmem:[%s68_s1] sm:$0x3] %v37_v9 }

// kernel: classification_head.1
= control target key start
LH: loop header
LB: loop body
LE: loop exit
PB: predicated region body
PF: predicated region fallthrough
CT: control target
= control target key end

     0   :  { %s179_s0 = inlined_call_operand.vmem [shape: f32[2,128], index: 0, kind: input, shape index: {}]   ;;  %s180_s1 = inlined_call_operand.vmem [shape: f32[128,128], index: 1, kind: input, shape index: {}]   ;;  %s181_s2 = inlined_call_operand.vmem [shape: f32[1,128], index: 2, kind: input, shape index: {}]   ;;  %s182_s3 = inlined_call_operand.hbm [shape: f32[2,128], index: 3, kind: output, shape index: {}]  }
   0x1   :  { %v31_v0 = vld [vmem:[%s180_s1 + $0x78] sm:$0xff]  ;;  %v30_v1 = vld [vmem:[%s180_s1 + $0x70] sm:$0xff]  ;;  %v29_v2 = vld [vmem:[%s180_s1 + $0x68] sm:$0xff] }
   0x2   :  { %36 = vmatpush.msra.mxu0 %v31_v0  ;;  %v28_v3 = vld [vmem:[%s180_s1 + $0x60] sm:$0xff]  ;;  %v27_v4 = vld [vmem:[%s180_s1 + $0x58] sm:$0xff] }
   0x4   :  { %37 = vmatpush.msra.mxu0 %v30_v1 }
   0x6   :  { %38 = vmatpush.msra.mxu0 %v29_v2 }
   0x7   :  { %8 = vsyncpa [#allocation3], 0  ;;  %v26_v5 = vld [vmem:[%s180_s1 + $0x50] sm:$0xff]  ;;  %v25_v6 = vld [vmem:[%s180_s1 + $0x48] sm:$0xff]  ;;  %s101_s21 = smov [#allocation2]   ;;  %s64_s25 = sshll.u32 %s182_s3, 4  ;;  %s65_s25 = int_to_ptr.hbm [resolvable:$true] %s64_s25 }
   0x8   :  { %39 = vmatpush.msra.mxu0 %v28_v3  ;;  %v24_v7 = vld [vmem:[%s180_s1 + $0x40] sm:$0xff]  ;;  %v23_v8 = vld [vmem:[%s180_s1 + $0x38] sm:$0xff]  ;;  %v22_v9 = vld [vmem:[%s180_s1 + $0x30] sm:$0xff]  ;;  %s62_s22 = sshll.u32 %s101_s21, 4  ;;  %s63_s22 = int_to_ptr.vmem [resolvable:$true] %s62_s22 }
   0x9   :  { %v21_v10 = vld [vmem:[%s180_s1 + $0x28] sm:$0xff]  ;;  %v20_v11 = vld [vmem:[%s180_s1 + $0x20] sm:$0xff]  ;;  %v19_v12 = vld [vmem:[%s180_s1 + $0x18] sm:$0xff] }
   0xa   :  { %40 = vmatpush.msra.mxu0 %v27_v4  ;;  %v18_v13 = vld [vmem:[%s180_s1 + $0x10] sm:$0xff]  ;;  %v17_v14 = vld [vmem:[%s180_s1 + $0x8] sm:$0xff]  ;;  %v16_v15 = vld [vmem:[%s180_s1] sm:$0xff] }
   0xb   :  { %v15_v16 = vld [vmem:[%s179_s0] sm:$0x3] }
   0xc   :  { %41 = vmatpush.msra.mxu0 %v26_v5  ;;  %v74_v17 = vld [vmem:[%s181_s2] ss:$0 sm:$0xff] }
   0xe   :  { %42 = vmatpush.msra.mxu0 %v25_v6 }
  0x10   :  { %43 = vmatpush.msra.mxu0 %v24_v7 }
  0x12   :  { %44 = vmatpush.msra.mxu0 %v23_v8 }
  0x14   :  { %45 = vmatpush.msra.mxu0 %v22_v9 }
  0x16   :  { %46 = vmatpush.msra.mxu0 %v21_v10 }
  0x18   :  { %47 = vmatpush.msra.mxu0 %v20_v11 }
  0x1a   :  { %48 = vmatpush.msra.mxu0 %v19_v12 }
  0x1c   :  { %49 = vmatpush.msra.mxu0 %v18_v13 }
  0x1e   :  { %50 = vmatpush.msra.mxu0 %v17_v14 }
  0x20   :  { %51 = vmatpush.msra.mxu0 %v16_v15 }
  0x21   :  { %52 = vmatmul.f32.vlgmr.msra.gmra.mxu0 %v15_v16 }
  0x9e   :  { %v53_v18 = vpop.f32.mrf.mxu0 }
  0x9f   :  { %v54_v19 = vadd.f32 %v74_v17, %v53_v18 }
  0xa1   :  { %56 = vst [vmem:[#allocation2] sm:$0x3] %v54_v19 }
  0xa2   :  { %67 = dma.vmem_to_hbm [thread:$0]  %s63_s22, 32, %s65_s25, [#allocation3]  }
  0xa3   :  { %99 = dma.done.wait [#allocation3], 32  }
  0xa4   :  { %100 = vsyncadd [#allocation3], 4294967264 }
  0xa5   :  { %72 = vsyncpa [#allocation3], 1 }

</bundles_post_ra>
